<compile_context>
chip_gen: v7x
topology: tpu7x:2x2x1
jax: 0.10.0
libtpu: 0.0.40
codegen_flags: <defaults>
</compile_context>

<pallas_src>
import math

import jax
import jax.numpy as jnp
from jax.experimental import pallas as pl
from jax.experimental.pallas import tpu as pltpu


def _switch_convexity_kernel(x_ref, a_ref, o_ref):
    x = x_ref[...]                       # (tile_b, tile_d)
    a = a_ref[...]                       # (1, tile_d) -> broadcasts over rows
    pos = jnp.maximum(x, 0.0)            # relu(x)
    neg = jnp.minimum(x, 0.0)            # -relu(-x)
    o_ref[...] = a * pos + (1.0 - a) * neg


def _pick_target_block_bytes():
    """Generation-aware block budget for this HBM-bound streaming kernel."""
    try:
        kind = jax.devices()[0].device_kind.lower()
    except Exception:
        return 4 << 20
    if "v5" in kind:
        return 2 << 20      # v5e: keep working set small (16 MiB scoped default)
    if "v6" in kind:
        return 4 << 20      # v6e: ~16 MiB working set, fits 32 MiB scoped default
    return 6 << 20          # v7x+: amortize per-step overhead against 3.2 TB/s HBM


def _row_fold(B, D):
    """Fold k rows into the lane axis so the last dim is a 128-multiple."""
    if D % 128 == 0:
        return 1
    k = 128 // math.gcd(D, 128)
    if k > 1 and B % k == 0:
        return k
    return 1


def _choose_tile_d(D, itemsize, target_block_bytes, sublane):
    """Prefer the full row (contiguous DMA); split only for extremely wide D."""
    if sublane * D * itemsize <= target_block_bytes:
        return D
    lanes = max(1, target_block_bytes // (sublane * itemsize * 128)) * 128
    return min(lanes, max(128, (D // 128) * 128))


def _choose_tile_b(B, tile_d, itemsize, target_block_bytes, sublane):
    """Block-budget rows, dtype-aware sublane multiple, >= 2 batch blocks."""
    rows = max(sublane, target_block_bytes // max(1, tile_d * itemsize))
    tile_b = min(B, rows)
    tile_b = max(sublane, (tile_b // sublane) * sublane)
    # Keep at least 2 batch blocks when possible (v7x has 2 TensorCores).
    half = -(-B // 2)
    if B >= 2 * sublane and tile_b > half:
        tile_b = max(sublane, (half // sublane) * sublane)
    return tile_b


def switch_convexity(x, a, *, target_block_bytes=None):
    """x: (..., D) float; a: (D,) per-feature switch in [0,1] (ReLU activation)."""
    orig_shape = x.shape
    D = orig_shape[-1]
    assert a.shape == (D,), "a must be a per-feature vector over the last dim"

    x2 = x.reshape(-1, D)
    B = x2.shape[0]
    itemsize = jnp.dtype(x2.dtype).itemsize
    sublane = max(8, 32 // itemsize)     # 8 for f32, 16 for bf16, 32 for int8

    if target_block_bytes is None:
        target_block_bytes = _pick_target_block_bytes()

    # Lane-density: fold rows when D is not a multiple of 128.
    a2 = a.astype(x2.dtype)
    k = _row_fold(B, D)
    if k > 1:
        x2 = x2.reshape(B // k, k * D)
        a2 = jnp.tile(a2, k)
    Bf, Df = x2.shape
    a2 = a2.reshape(1, Df)

    tile_d = _choose_tile_d(Df, itemsize, target_block_bytes, sublane)
    tile_b = _choose_tile_b(Bf, tile_d, itemsize, target_block_bytes, sublane)

    # cdiv grid: the ragged last block (batch and/or feature) is masked by
    # Pallas — no jnp.pad / output-slice round-trip, no extra HBM pass.
    grid = (pl.cdiv(Bf, tile_b), pl.cdiv(Df, tile_d))

    block_bytes = tile_b * tile_d * itemsize
    vmem_needed = 4 * block_bytes + 2 * tile_d * itemsize   # x+out double-buffered + a
    vmem_limit = int(min(48 << 20, max(32 << 20, int(vmem_needed * 1.5))))

    cost = pl.CostEstimate(
        flops=4 * Bf * Df,
        transcendentals=0,
        bytes_accessed=(2 * Bf * Df + Df) * itemsize,
    )

    out = pl.pallas_call(
        _switch_convexity_kernel,
        out_shape=jax.ShapeDtypeStruct((Bf, Df), x2.dtype),
        grid_spec=pltpu.PrefetchScalarGridSpec(
            num_scalar_prefetch=0,
            grid=grid,
            in_specs=[
                pl.BlockSpec((tile_b, tile_d), lambda i, j: (i, j)),
                pl.BlockSpec((1, tile_d), lambda i, j: (0, j)),
            ],
            out_specs=pl.BlockSpec((tile_b, tile_d), lambda i, j: (i, j)),
        ),
        compiler_params=pltpu.CompilerParams(
            dimension_semantics=("parallel", "parallel"),
            vmem_limit_bytes=vmem_limit,
        ),
        cost_estimate=cost,
    )(x2, a2)

    return out.reshape(orig_shape)


def switch_convexity_ref(x, a):
    """Pure-JAX reference: the original blended PyTorch form with ReLU."""
    a2 = a.reshape((1,) * (x.ndim - 1) + (-1,)).astype(x.dtype)
    relu = lambda t: jnp.maximum(t, 0.0)
    return a2 * relu(x) + (1.0 - a2) * (-relu(-x))


if __name__ == "__main__":
    key = jax.random.PRNGKey(0)
    k_x1, k_a1, k_x2, k_a2 = jax.random.split(key, 4)

    # Case 1: small feature dim (D=32 < 128) -> exercises the lane-folding path.
    x1 = jax.random.normal(k_x1, (2, 8, 32), dtype=jnp.float32)
    a1 = (jax.random.uniform(k_a1, (32,)) > 0.5).astype(jnp.float32)
    out1 = jax.block_until_ready(switch_convexity(x1, a1))
    ref1 = switch_convexity_ref(x1, a1)
    assert out1.shape == x1.shape
    assert jnp.allclose(out1, ref1, atol=1e-6), "mismatch vs reference (case 1)"

    # Case 2: ragged batch (10 rows, not a multiple of 8) + lane-aligned D=256
    # -> exercises the masked last batch block (no padding path anymore).
    x2 = jax.random.normal(k_x2, (10, 256), dtype=jnp.float32)
    a2 = (jax.random.uniform(k_a2, (256,)) > 0.5).astype(jnp.float32)
    out2 = jax.block_until_ready(switch_convexity(x2, a2))
    ref2 = switch_convexity_ref(x2, a2)
    assert out2.shape == x2.shape
    assert jnp.allclose(out2, ref2, atol=1e-6), "mismatch vs reference (case 2)"

    print("KERNEL_OK")
</pallas_src>

<mosaic_0001>
module attributes {stable_mosaic.version = 11 : i64} {
  func.func @_switch_convexity_kernel(%arg0: i32, %arg1: i32, %arg2: memref<8x128xf32, #tpu.memory_space<vmem>>, %arg3: memref<1x128xf32, #tpu.memory_space<vmem>>, %arg4: memref<8x128xf32, #tpu.memory_space<vmem>>) attributes {dimension_semantics = [#tpu.dimension_semantics<parallel>, #tpu.dimension_semantics<parallel>], iteration_bounds = array<i64: 1, 1>, scalar_prefetch = 0 : i64, scratch_operands = 0 : i64, tpu.core_type = #tpu.core_type<tc>, window_params = [{transform_indices = @transform_0, window_bounds = array<i64: 8, 128>}, {transform_indices = @transform_1, window_bounds = array<i64: 1, 128>}, {transform_indices = @transform_2, window_bounds = array<i64: 8, 128>}]} {
    %c0 = arith.constant 0 : index
    %c0_0 = arith.constant 0 : index
    %0 = vector.load %arg2[%c0, %c0_0] : memref<8x128xf32, #tpu.memory_space<vmem>>, vector<8x128xf32>
    %c0_1 = arith.constant 0 : index
    %c0_2 = arith.constant 0 : index
    %1 = vector.load %arg3[%c0_1, %c0_2] : memref<1x128xf32, #tpu.memory_space<vmem>>, vector<1x128xf32>
    %cst = arith.constant 0.000000e+00 : f32
    %2 = vector.broadcast %cst : f32 to vector<8x128xf32>
    %3 = arith.maximumf %0, %2 : vector<8x128xf32>
    %cst_3 = arith.constant 0.000000e+00 : f32
    %4 = vector.broadcast %cst_3 : f32 to vector<8x128xf32>
    %5 = arith.minimumf %0, %4 : vector<8x128xf32>
    %6 = vector.broadcast %1 : vector<1x128xf32> to vector<8x128xf32>
    %7 = arith.mulf %6, %3 : vector<8x128xf32>
    %cst_4 = arith.constant 1.000000e+00 : f32
    %8 = vector.broadcast %cst_4 : f32 to vector<1x128xf32>
    %9 = arith.subf %8, %1 : vector<1x128xf32>
    %10 = vector.broadcast %9 : vector<1x128xf32> to vector<8x128xf32>
    %11 = arith.mulf %10, %5 : vector<8x128xf32>
    %12 = arith.addf %7, %11 : vector<8x128xf32>
    %c0_5 = arith.constant 0 : index
    %c0_6 = arith.constant 0 : index
    %13 = vector.load %arg4[%c0_5, %c0_6] : memref<8x128xf32, #tpu.memory_space<vmem>>, vector<8x128xf32>
    tpu.vector_store %arg4[%c0_5, %c0_6], %12 {strides = array<i32>} : memref<8x128xf32, #tpu.memory_space<vmem>>, vector<8x128xf32>,
    return
  }
  func.func @transform_0(%arg0: i32, %arg1: i32) -> (i32, i32) {
    %c0_i32 = arith.constant 0 : i32
    return %arg0, %arg1 : i32, i32
  }
  func.func @transform_1(%arg0: i32, %arg1: i32) -> (i32, i32) {
    %c0_i32 = arith.constant 0 : i32
    %c0_i32_0 = arith.constant 0 : i32
    return %c0_i32, %arg1 : i32, i32
  }
  func.func @transform_2(%arg0: i32, %arg1: i32) -> (i32, i32) {
    %c0_i32 = arith.constant 0 : i32
    return %arg0, %arg1 : i32, i32
  }
}

</mosaic_0001>

<bundles_post_ra>
// kernel: tpu_custom_call.1
= control target key start
LH: loop header
LB: loop body
LE: loop exit
PB: predicated region body
PF: predicated region fallthrough
CT: control target
= control target key end

     0   :  { %7 = vsyncpa [#allocation3], 0  ;;  %s168_s0 = inlined_call_operand.hbm [shape: f32[4,128], index: 0, kind: input, shape index: {}]   ;;  %s169_s1 = inlined_call_operand.vmem [shape: f32[1,128], index: 1, kind: input, shape index: {}]   ;;  %s170_s2 = inlined_call_operand.hbm [shape: f32[4,128], index: 2, kind: output, shape index: {}]  }
   0x1   :  { %8 = vsyncpa [#allocation4], 0 }
   0x2   :  { %13 = vsyncadd [#allocation3], 64  ;;  %s116_s9 = smov [#allocation2]   ;;  %s68_s13 = scalar_lea.hbm %s168_s0, 64 }
   0x3   :  { %s14_s10 = sshll.u32 %s116_s9, 4  ;;  %p69_p0 = scmp.ne.s32.totalorder %s168_s0, %s68_s13  ;;  %s15_s10 = int_to_ptr.vmem [resolvable:$true] %s14_s10 }
   0x4   :  { %p72_p1 = scmp.lt.u32.totalorder %s68_s13, %s168_s0 }
   0x6   :  { %p74_p2 = pnand %p72_p1, %p69_p0 }
   0x8   :  { %77 = shalt.err (!%p74_p2)
}
   0x9   :  { %s78_s18 = scalar_lea.vmem %s15_s10, 64  ;;  %s82_s19 = scalar_lea.vmem %s15_s10, 128 }
   0xa   :  { %p79_p3 = scmp.ne.s32.totalorder %s15_s10, %s78_s18  ;;  %p83_p4 = scmp.lt.s32.totalorder %s15_s10, %s15_s10 }
   0xb   :  { %p84_p5 = scmp.lt.s32.totalorder %s82_s19, %s78_s18 }
   0xd   :  { %p85_p6 = por %p84_p5, %p83_p4 }
   0xf   :  { %p86_p7 = pnand %p85_p6, %p79_p3 }
  0x11   :  { %89 = shalt.err (!%p86_p7)
}
  0x12   :  { %s117_s20 = smov 64   ;;  %s118_s21 = smov 4  }
  0x13   :  { %20 = dma.hbm_to_vmem [thread:$0]  %s168_s0, 64, %s15_s10, [#allocation3], %s117_s20, %s117_s20, %s118_s21  }
  0x14   :  { %112 = dma.done.wait [#allocation3], 128  }
  0x15   :  { %113 = vsyncadd [#allocation3], 4294967168  ;;  %v31_v0 = vlaneseq  ;;  %v26_v3 = vld [vmem:[#allocation2] sm:$0xff] }
  0x16   :  { %v27_v4 = vld [vmem:[%s169_s1] sm:$0x1]  ;;  %v28_v5 = vmax.f32 %v26_v3, 0.0  ;;  %v29_v6 = vmin.f32 %v26_v3, 0.0 }
  0x17   :  { %v32_v1 = vshrl.u32 %v31_v0, 7  ;;  %v37_v8 = vsub.f32 1.0, %v27_v4 }
  0x19   :  { %v33_v2 = vsub.s32 0, %v32_v1 }
  0x1b   :  { %v34_v7 = vrot.slane %v27_v4, %v33_v2  ;;  %v42_v10 = vrot.slane %v37_v8, %v33_v2 }
  0x1d   :  { %v36_v9 = vmul.f32 %v34_v7, %v28_v5  ;;  %v44_v11 = vmul.f32 %v42_v10, %v29_v6 }
  0x1f   :  { %v45_v12 = vadd.f32 %v44_v11, %v36_v9 }
  0x21   :  { %46 = vst [vmem:[#allocation5] sm:$0xff] %v45_v12 }
  0x22   :  { %51 = vsyncadd [#allocation4], 64  ;;  %s119_s0 = smov [#allocation5]  }
  0x23   :  { %s52_s26 = sshll.u32 %s119_s0, 4  ;;  %s53_s26 = int_to_ptr.vmem [resolvable:$true] %s52_s26 }
  0x24   :  { %s90_s27 = scalar_lea.vmem %s53_s26, 64  ;;  %s94_s28 = scalar_lea.vmem %s53_s26, 128 }
  0x25   :  { %p91_p8 = scmp.ne.s32.totalorder %s53_s26, %s90_s27  ;;  %p95_p9 = scmp.lt.s32.totalorder %s53_s26, %s53_s26 }
  0x26   :  { %p96_p10 = scmp.lt.s32.totalorder %s94_s28, %s90_s27 }
  0x28   :  { %p97_p11 = por %p96_p10, %p95_p9 }
  0x2a   :  { %p98_p12 = pnand %p97_p11, %p91_p8 }
  0x2c   :  { %101 = shalt.err (!%p98_p12)
}
  0x2d   :  { %s102_s30 = scalar_lea.hbm %s170_s2, 64 }
  0x2e   :  { %p103_p13 = scmp.ne.s32.totalorder %s170_s2, %s102_s30  ;;  %p106_p0 = scmp.lt.u32.totalorder %s102_s30, %s170_s2 }
  0x30   :  { %p108_p1 = pnand %p106_p0, %p103_p13 }
  0x32   :  { %111 = shalt.err (!%p108_p1)
}
  0x33   :  { %58 = dma.vmem_to_hbm [thread:$0]  %s53_s26, 64, %s170_s2, [#allocation4], %s117_s20, %s117_s20, %s118_s21  }
  0x34   :  { %114 = dma.done.wait [#allocation4], 128  }
  0x35   :  { %115 = vsyncadd [#allocation4], 4294967168 }
  0x36   :  { %62 = vsyncpa [#allocation3], 1 }
  0x37   :  { %63 = vsyncpa [#allocation4], 1 }

</bundles_post_ra>
